<compile_context>
chip_gen: v7x
topology: tpu7x:2x2x1
jax: 0.10.0
libtpu: 0.0.40
codegen_flags: <defaults>
</compile_context>

<pallas_src>
import jax
import jax.numpy as jnp
import numpy as np
from jax.experimental import pallas as pl
from jax.experimental.pallas import tpu as pltpu

_COMPUTE_DTYPE = jnp.bfloat16   # MXU-native on v5e/v6e/v7x; halves patch DMA.
_VMEM_LIMIT = 32 * 1024 * 1024  # == v7x scoped default; safe on every gen.


def _round_up(v, m):
    return ((v + m - 1) // m) * m


def _pick_tile_hw(HW, t_max=8192, t_min=512):
    """Per-image lane-tile size over Ho*Wo.

    1) single full tile if HW <= t_max (block == full dim, no padding);
    2) largest multiple-of-128 exact divisor of HW in [t_min, t_max]
       (lane dense, no padded output-slice copy);
    3) otherwise pad HW to a multiple of a ~t_max tile (fallback; costs one
       output-slice copy at the end)."""
    if HW <= t_max:
        return HW, HW
    if HW % 128 == 0:
        t = t_max - t_max % 128
        while t >= t_min:
            if HW % t == 0:
                return t, HW
            t -= 128
    nt = pl.cdiv(HW, t_max)
    t = _round_up(pl.cdiv(HW, nt), 128)
    return t, nt * t


# ----------------------------------------------------------------------------
# Pass 1: conv-as-matmul (K-major, MXU) -> per-block BN partial statistics only.
# The (Cout, thw) conv tile never leaves VMEM.
# ----------------------------------------------------------------------------
def _conv_stats_kernel(w_ref, a_ref, s_ref, ss_ref):
    # w_ref:  (Cout, Kp) bf16, resident (constant block index)
    # a_ref:  (1, Kp, thw) bf16 patch tile, lanes = output pixels
    # s_ref / ss_ref: (1, 1, Cout, 1) f32 per-block partial sum / sum-of-squares
    y = jnp.dot(w_ref[...], a_ref[0], preferred_element_type=jnp.float32)
    cout = y.shape[0]
    s_ref[...] = jnp.sum(y, axis=1, keepdims=True).reshape(1, 1, cout, 1)
    ss_ref[...] = jnp.sum(y * y, axis=1, keepdims=True).reshape(1, 1, cout, 1)


def conv_batch_stats(w_p, patches, *, thw):
    N, Kp, HW_pad = patches.shape
    Cout = w_p.shape[0]
    n_hw = HW_pad // thw
    cost = pl.CostEstimate(
        flops=2 * N * HW_pad * Kp * Cout + 3 * N * HW_pad * Cout,
        transcendentals=0,
        bytes_accessed=(patches.size * patches.dtype.itemsize
                        + w_p.size * w_p.dtype.itemsize
                        + 2 * N * n_hw * Cout * 4))
    return pl.pallas_call(
        _conv_stats_kernel,
        out_shape=(jax.ShapeDtypeStruct((N, n_hw, Cout, 1), jnp.float32),
                   jax.ShapeDtypeStruct((N, n_hw, Cout, 1), jnp.float32)),
        grid_spec=pltpu.PrefetchScalarGridSpec(
            num_scalar_prefetch=0,
            grid=(N, n_hw),
            in_specs=[
                pl.BlockSpec((Cout, Kp), lambda n, i: (0, 0)),
                pl.BlockSpec((1, Kp, thw), lambda n, i: (n, 0, i)),
            ],
            out_specs=(
                pl.BlockSpec((1, 1, Cout, 1), lambda n, i: (n, i, 0, 0)),
                pl.BlockSpec((1, 1, Cout, 1), lambda n, i: (n, i, 0, 0)),
            )),
        compiler_params=pltpu.CompilerParams(
            dimension_semantics=("parallel", "parallel"),
            vmem_limit_bytes=_VMEM_LIMIT),
        cost_estimate=cost,
    )(w_p, patches)


# ----------------------------------------------------------------------------
# Pass 2: recompute conv tile (cheap on the MXU) + fused BN scale/shift + ReLU,
# written straight into the (N, Cout, Ho*Wo) layout (lane-dense stores).
# ----------------------------------------------------------------------------
def _conv_bn_relu_kernel(w_ref, a_ref, scale_ref, bias_ref, o_ref):
    y = jnp.dot(w_ref[...], a_ref[0], preferred_element_type=jnp.float32)
    o_ref[0] = jnp.maximum(y * scale_ref[...] + bias_ref[...], 0.0)


def conv_bn_relu(w_p, patches, scale, bias, *, thw):
    N, Kp, HW_pad = patches.shape
    Cout = w_p.shape[0]
    n_hw = HW_pad // thw
    cost = pl.CostEstimate(
        flops=2 * N * HW_pad * Kp * Cout + 3 * N * HW_pad * Cout,
        transcendentals=0,
        bytes_accessed=(patches.size * patches.dtype.itemsize
                        + w_p.size * w_p.dtype.itemsize
                        + N * Cout * HW_pad * 4 + 2 * Cout * 4))
    return pl.pallas_call(
        _conv_bn_relu_kernel,
        out_shape=jax.ShapeDtypeStruct((N, Cout, HW_pad), jnp.float32),
        grid_spec=pltpu.PrefetchScalarGridSpec(
            num_scalar_prefetch=0,
            grid=(N, n_hw),
            in_specs=[
                pl.BlockSpec((Cout, Kp), lambda n, i: (0, 0)),
                pl.BlockSpec((1, Kp, thw), lambda n, i: (n, 0, i)),
                pl.BlockSpec((Cout, 1), lambda n, i: (0, 0)),
                pl.BlockSpec((Cout, 1), lambda n, i: (0, 0)),
            ],
            out_specs=pl.BlockSpec((1, Cout, thw), lambda n, i: (n, 0, i))),
        compiler_params=pltpu.CompilerParams(
            dimension_semantics=("parallel", "parallel"),
            vmem_limit_bytes=_VMEM_LIMIT),
        cost_estimate=cost,
    )(w_p, patches, scale, bias)


# ----------------------------------------------------------------------------
# K-major per-image im2col (3x3 / stride-2 / pad-1), K padded to Kp, HW padded
# to HW_pad.  Zero pads are exact no-ops for the conv and the BN statistics.
# ----------------------------------------------------------------------------
def _im2col(x_nchw, Ho, Wo, Kp, HW_pad, dtype):
    N, Cin, H, W = x_nchw.shape
    xp = jnp.pad(x_nchw, ((0, 0), (0, 0), (1, 1), (1, 1)))
    taps = []
    for kh in range(3):
        for kw in range(3):
            taps.append(xp[:, :, kh:kh + 2 * Ho:2, kw:kw + 2 * Wo:2])
    p = jnp.stack(taps, axis=1)                          # (N, 9, Cin, Ho, Wo)
    p = p.reshape(N, 9 * Cin, Ho * Wo).astype(dtype)     # K order = (kh, kw, ci)
    return jnp.pad(p, ((0, 0), (0, Kp - 9 * Cin), (0, HW_pad - Ho * Wo)))


# ----------------------------------------------------------------------------
# Full SimpleStemIN forward (Conv 3x3/s2 no-bias -> BatchNorm2d train-mode -> ReLU).
# ----------------------------------------------------------------------------
@jax.jit
def simple_stem_in(x_nchw, conv_w, bn_gamma, bn_beta):
    """x_nchw: (N, Cin, H, W) f32.  conv_w: (Cout, Cin, 3, 3) f32."""
    eps = 1e-5
    N, Cin, H, W = x_nchw.shape
    Cout = conv_w.shape[0]
    Ho = (H - 1) // 2 + 1
    Wo = (W - 1) // 2 + 1
    HW = Ho * Wo
    M = N * HW                                   # true element count per channel
    Kp = _round_up(9 * Cin, 32)
    thw, HW_pad = _pick_tile_hw(HW)

    patches = _im2col(x_nchw, Ho, Wo, Kp, HW_pad, _COMPUTE_DTYPE)      # (N, Kp, HW_pad)
    # (Cout, Cin, 3, 3) -> (Cout, kh, kw, ci) -> (Cout, Kp), matching patch K order.
    w_p = jnp.transpose(conv_w, (0, 2, 3, 1)).reshape(Cout, 9 * Cin)
    w_p = jnp.pad(w_p, ((0, 0), (0, Kp - 9 * Cin))).astype(_COMPUTE_DTYPE)

    # Pass 1: per-block BN partial statistics (no (Cout, M) intermediate in HBM).
    s_part, ss_part = conv_batch_stats(w_p, patches, thw=thw)
    s_tot = jnp.sum(s_part, axis=(0, 1))[:, 0]           # (Cout,)
    ss_tot = jnp.sum(ss_part, axis=(0, 1))[:, 0]

    # BatchNorm2d training-mode: batch mean / biased variance per channel, then
    # fold gamma/beta into a single per-channel scale/shift (all f32).
    mean = s_tot / M
    var = jnp.maximum(ss_tot / M - mean * mean, 0.0)
    scale = bn_gamma * jax.lax.rsqrt(var + eps)
    bias = bn_beta - mean * scale

    # Pass 2: recompute conv + fused BN + ReLU, written directly as (N, Cout, HW).
    out = conv_bn_relu(w_p, patches, scale.reshape(Cout, 1),
                       bias.reshape(Cout, 1), thw=thw)
    if HW_pad != HW:              # fallback path only (awkward Ho*Wo): one slice copy
        out = out[:, :, :HW]
    return out.reshape(N, Cout, Ho, Wo)           # free, contiguous reshape


if __name__ == "__main__":
    # Small, module-consistent shapes: ImageNet stem takes w_in=3 channels.
    N, Cin, H, W = 2, 3, 16, 16
    Cout = 32

    key = jax.random.PRNGKey(0)
    k_x, k_w = jax.random.split(key)
    x = jax.random.normal(k_x, (N, Cin, H, W), dtype=jnp.float32)
    conv_w = (jax.random.normal(k_w, (Cout, Cin, 3, 3), dtype=jnp.float32)
              * (1.0 / np.sqrt(Cin * 9)))
    bn_gamma = jnp.ones((Cout,), jnp.float32)   # BatchNorm2d default init
    bn_beta = jnp.zeros((Cout,), jnp.float32)

    out = simple_stem_in(x, conv_w, bn_gamma, bn_beta)
    out = jax.block_until_ready(out)

    # Reference: same math path (bf16 conv operands, f32 accumulation) via XLA
    # conv, then training-mode BN (batch mean / biased var) + ReLU in f32.
    ref_conv = jax.lax.conv_general_dilated(
        x.astype(_COMPUTE_DTYPE), conv_w.astype(_COMPUTE_DTYPE),
        window_strides=(2, 2), padding=((1, 1), (1, 1)),
        dimension_numbers=("NCHW", "OIHW", "NCHW"),
        preferred_element_type=jnp.float32)
    ref_mean = jnp.mean(ref_conv, axis=(0, 2, 3), keepdims=True)
    ref_var = jnp.mean(jnp.square(ref_conv - ref_mean), axis=(0, 2, 3), keepdims=True)
    ref = jnp.maximum((ref_conv - ref_mean) / jnp.sqrt(ref_var + 1e-5), 0.0)

    assert out.shape == (N, Cout, H // 2, W // 2), out.shape
    np.testing.assert_allclose(np.asarray(out), np.asarray(ref),
                               rtol=2e-2, atol=2e-2)

    print("KERNEL_OK")
</pallas_src>

<mosaic_0001>
module attributes {stable_mosaic.version = 11 : i64} {
  func.func @_conv_stats_kernel(%arg0: i32, %arg1: i32, %arg2: memref<32x32xbf16, #tpu.memory_space<vmem>>, %arg3: memref<1x32x64xbf16, #tpu.memory_space<vmem>>, %arg4: memref<1x1x32x1xf32, #tpu.memory_space<vmem>>, %arg5: memref<1x1x32x1xf32, #tpu.memory_space<vmem>>) attributes {dimension_semantics = [#tpu.dimension_semantics<parallel>, #tpu.dimension_semantics<parallel>], iteration_bounds = array<i64: 2, 1>, scalar_prefetch = 0 : i64, scratch_operands = 0 : i64, tpu.core_type = #tpu.core_type<tc>, window_params = [{pipeline_mode = #tpu.pipeline_mode<synchronous>, transform_indices = @transform_0, window_bounds = array<i64: 32, 32>}, {transform_indices = @transform_1, window_bounds = array<i64: 1, 32, 64>}, {transform_indices = @transform_2, window_bounds = array<i64: 1, 1, 32, 1>}, {transform_indices = @transform_3, window_bounds = array<i64: 1, 1, 32, 1>}]} {
    %c0 = arith.constant 0 : index
    %c0_0 = arith.constant 0 : index
    %0 = vector.load %arg2[%c0, %c0_0] : memref<32x32xbf16, #tpu.memory_space<vmem>>, vector<32x32xbf16>
    %c0_1 = arith.constant 0 : index
    %c0_2 = arith.constant 0 : index
    %c0_3 = arith.constant 0 : index
    %1 = vector.load %arg3[%c0_1, %c0_2, %c0_3] : memref<1x32x64xbf16, #tpu.memory_space<vmem>>, vector<1x32x64xbf16>
    %2 = vector.shape_cast %1 : vector<1x32x64xbf16> to vector<32x64xbf16>
    %cst = arith.constant dense<0.000000e+00> : vector<32x64xf32>
    %3 = tpu.matmul %0, %2, %cst {dimension_numbers = #tpu.dot_dimension_numbers<[1], [0], [0], [1], [0, 0, 1, 1], [], []>} : vector<32x32xbf16>, vector<32x64xbf16>, vector<32x64xf32> -> vector<32x64xf32>
    %cst_4 = arith.constant dense<0.000000e+00> : vector<32xf32>
    %4 = vector.multi_reduction <add>, %3, %cst_4 [1] : vector<32x64xf32> to vector<32xf32>
    %5 = vector.shape_cast %4 : vector<32xf32> to vector<32x1xf32>
    %6 = vector.shape_cast %5 : vector<32x1xf32> to vector<1x1x32x1xf32>
    %c0_5 = arith.constant 0 : index
    %c0_6 = arith.constant 0 : index
    %c0_7 = arith.constant 0 : index
    %c0_8 = arith.constant 0 : index
    %7 = vector.load %arg4[%c0_5, %c0_6, %c0_7, %c0_8] : memref<1x1x32x1xf32, #tpu.memory_space<vmem>>, vector<1x1x32x1xf32>
    tpu.vector_store %arg4[%c0_5, %c0_6, %c0_7, %c0_8], %6 {strides = array<i32>} : memref<1x1x32x1xf32, #tpu.memory_space<vmem>>, vector<1x1x32x1xf32>,
    %8 = arith.mulf %3, %3 : vector<32x64xf32>
    %cst_9 = arith.constant dense<0.000000e+00> : vector<32xf32>
    %9 = vector.multi_reduction <add>, %8, %cst_9 [1] : vector<32x64xf32> to vector<32xf32>
    %10 = vector.shape_cast %9 : vector<32xf32> to vector<32x1xf32>
    %11 = vector.shape_cast %10 : vector<32x1xf32> to vector<1x1x32x1xf32>
    %c0_10 = arith.constant 0 : index
    %c0_11 = arith.constant 0 : index
    %c0_12 = arith.constant 0 : index
    %c0_13 = arith.constant 0 : index
    %12 = vector.load %arg5[%c0_10, %c0_11, %c0_12, %c0_13] : memref<1x1x32x1xf32, #tpu.memory_space<vmem>>, vector<1x1x32x1xf32>
    tpu.vector_store %arg5[%c0_10, %c0_11, %c0_12, %c0_13], %11 {strides = array<i32>} : memref<1x1x32x1xf32, #tpu.memory_space<vmem>>, vector<1x1x32x1xf32>,
    return
  }
  func.func @transform_0(%arg0: i32, %arg1: i32) -> (i32, i32) {
    %c0_i32 = arith.constant 0 : i32
    %c0_i32_0 = arith.constant 0 : i32
    %c0_i32_1 = arith.constant 0 : i32
    return %c0_i32, %c0_i32_0 : i32, i32
  }
  func.func @transform_1(%arg0: i32, %arg1: i32) -> (i32, i32, i32) {
    %c0_i32 = arith.constant 0 : i32
    %c0_i32_0 = arith.constant 0 : i32
    return %arg0, %c0_i32, %arg1 : i32, i32, i32
  }
  func.func @transform_2(%arg0: i32, %arg1: i32) -> (i32, i32, i32, i32) {
    %c0_i32 = arith.constant 0 : i32
    %c0_i32_0 = arith.constant 0 : i32
    %c0_i32_1 = arith.constant 0 : i32
    return %arg0, %arg1, %c0_i32, %c0_i32_0 : i32, i32, i32, i32
  }
  func.func @transform_3(%arg0: i32, %arg1: i32) -> (i32, i32, i32, i32) {
    %c0_i32 = arith.constant 0 : i32
    %c0_i32_0 = arith.constant 0 : i32
    %c0_i32_1 = arith.constant 0 : i32
    return %arg0, %arg1, %c0_i32, %c0_i32_0 : i32, i32, i32, i32
  }
}

module attributes {stable_mosaic.version = 11 : i64} {
  func.func @_conv_bn_relu_kernel(%arg0: i32, %arg1: i32, %arg2: memref<32x32xbf16, #tpu.memory_space<vmem>>, %arg3: memref<1x32x64xbf16, #tpu.memory_space<vmem>>, %arg4: memref<32x1xf32, #tpu.memory_space<vmem>>, %arg5: memref<32x1xf32, #tpu.memory_space<vmem>>, %arg6: memref<1x32x64xf32, #tpu.memory_space<vmem>>) attributes {dimension_semantics = [#tpu.dimension_semantics<parallel>, #tpu.dimension_semantics<parallel>], iteration_bounds = array<i64: 2, 1>, scalar_prefetch = 0 : i64, scratch_operands = 0 : i64, tpu.core_type = #tpu.core_type<tc>, window_params = [{pipeline_mode = #tpu.pipeline_mode<synchronous>, transform_indices = @transform_0, window_bounds = array<i64: 32, 32>}, {transform_indices = @transform_1, window_bounds = array<i64: 1, 32, 64>}, {pipeline_mode = #tpu.pipeline_mode<synchronous>, transform_indices = @transform_2, window_bounds = array<i64: 32, 1>}, {pipeline_mode = #tpu.pipeline_mode<synchronous>, transform_indices = @transform_3, window_bounds = array<i64: 32, 1>}, {transform_indices = @transform_4, window_bounds = array<i64: 1, 32, 64>}]} {
    %c0 = arith.constant 0 : index
    %c0_0 = arith.constant 0 : index
    %0 = vector.load %arg2[%c0, %c0_0] : memref<32x32xbf16, #tpu.memory_space<vmem>>, vector<32x32xbf16>
    %c0_1 = arith.constant 0 : index
    %c0_2 = arith.constant 0 : index
    %c0_3 = arith.constant 0 : index
    %1 = vector.load %arg3[%c0_1, %c0_2, %c0_3] : memref<1x32x64xbf16, #tpu.memory_space<vmem>>, vector<1x32x64xbf16>
    %2 = vector.shape_cast %1 : vector<1x32x64xbf16> to vector<32x64xbf16>
    %cst = arith.constant dense<0.000000e+00> : vector<32x64xf32>
    %3 = tpu.matmul %0, %2, %cst {dimension_numbers = #tpu.dot_dimension_numbers<[1], [0], [0], [1], [0, 0, 1, 1], [], []>} : vector<32x32xbf16>, vector<32x64xbf16>, vector<32x64xf32> -> vector<32x64xf32>
    %c0_4 = arith.constant 0 : index
    %c0_5 = arith.constant 0 : index
    %4 = vector.load %arg4[%c0_4, %c0_5] : memref<32x1xf32, #tpu.memory_space<vmem>>, vector<32x1xf32>
    %5 = vector.broadcast %4 : vector<32x1xf32> to vector<32x64xf32>
    %6 = arith.mulf %3, %5 : vector<32x64xf32>
    %c0_6 = arith.constant 0 : index
    %c0_7 = arith.constant 0 : index
    %7 = vector.load %arg5[%c0_6, %c0_7] : memref<32x1xf32, #tpu.memory_space<vmem>>, vector<32x1xf32>
    %8 = vector.broadcast %7 : vector<32x1xf32> to vector<32x64xf32>
    %9 = arith.addf %6, %8 : vector<32x64xf32>
    %cst_8 = arith.constant 0.000000e+00 : f32
    %10 = vector.broadcast %cst_8 : f32 to vector<32x64xf32>
    %11 = arith.maximumf %9, %10 : vector<32x64xf32>
    %c0_9 = arith.constant 0 : index
    %c0_10 = arith.constant 0 : index
    %c0_11 = arith.constant 0 : index
    %12 = vector.load %arg6[%c0_9, %c0_10, %c0_11] : memref<1x32x64xf32, #tpu.memory_space<vmem>>, vector<1x32x64xf32>
    %13 = vector.shape_cast %12 : vector<1x32x64xf32> to vector<32x64xf32>
    %14 = vector.shape_cast %11 : vector<32x64xf32> to vector<1x32x64xf32>
    tpu.vector_store %arg6[%c0_9, %c0_10, %c0_11], %14 {strides = array<i32>} : memref<1x32x64xf32, #tpu.memory_space<vmem>>, vector<1x32x64xf32>,
    return
  }
  func.func @transform_0(%arg0: i32, %arg1: i32) -> (i32, i32) {
    %c0_i32 = arith.constant 0 : i32
    %c0_i32_0 = arith.constant 0 : i32
    %c0_i32_1 = arith.constant 0 : i32
    return %c0_i32, %c0_i32_0 : i32, i32
  }
  func.func @transform_1(%arg0: i32, %arg1: i32) -> (i32, i32, i32) {
    %c0_i32 = arith.constant 0 : i32
    %c0_i32_0 = arith.constant 0 : i32
    return %arg0, %c0_i32, %arg1 : i32, i32, i32
  }
  func.func @transform_2(%arg0: i32, %arg1: i32) -> (i32, i32) {
    %c0_i32 = arith.constant 0 : i32
    %c0_i32_0 = arith.constant 0 : i32
    %c0_i32_1 = arith.constant 0 : i32
    return %c0_i32, %c0_i32_0 : i32, i32
  }
  func.func @transform_3(%arg0: i32, %arg1: i32) -> (i32, i32) {
    %c0_i32 = arith.constant 0 : i32
    %c0_i32_0 = arith.constant 0 : i32
    %c0_i32_1 = arith.constant 0 : i32
    return %c0_i32, %c0_i32_0 : i32, i32
  }
  func.func @transform_4(%arg0: i32, %arg1: i32) -> (i32, i32, i32) {
    %c0_i32 = arith.constant 0 : i32
    %c0_i32_0 = arith.constant 0 : i32
    return %arg0, %c0_i32, %arg1 : i32, i32, i32
  }
}

</mosaic_0001>

<bundles_post_ra>
// kernel: simple_stem_in.2
= control target key start
LH: loop header
LB: loop body
LE: loop exit
PB: predicated region body
PF: predicated region fallthrough
CT: control target
= control target key end

     0   :  { %s600_s12 = smov 0   ;;  %s602_s13 = smov 0   ;;  %s662_s0 = inlined_call_operand.vmem [shape: bf16[32,32], index: 0, kind: input, shape index: {}]   ;;  %s663_s1 = inlined_call_operand.vmem [shape: bf16[2,32,64], index: 1, kind: input, shape index: {}]   ;;  %s664_s2 = inlined_call_operand.vmem [shape: f32[2,1,32,1], index: 2, kind: output, shape index: {0}]   ;;  %s665_s3 = inlined_call_operand.vmem [shape: f32[2,1,32,1], index: 3, kind: output, shape index: {1}]  }
   0x1   :  { %s604_s14 = smov 0  }
   0x2 LB: > { %s26_s15 = sadd.s32 1, %s574_s13  ;;  %p498_p0 = scmp.ge.s32.totalorder %s578_s14, 1  ;;  %s578_s14 = sphi %s604_s14, %s14_s14   ;;  %s574_s13 = sphi %s602_s13, %s667_s13   ;;  %s570_s12 = sphi %s600_s12, %s666_s12  }
   0x3   : > { %p28_p1 = scmp.ge.s32.totalorder %s26_s15, 2  ;;  %p161_p2 = scmp.lt.s32.totalorder %s578_s14, 3 }
   0x5   : > { %s669_s15 = smov (%p28_p1, %s26_s15), 0  ;;  %p162_p3 = pnand %p498_p0, %p161_p2 }
   0x6   : > { %p201_p4 = scmp.lt.s32.totalorder (!%p162_p3), %s570_s12, 1  ;;  %v554_v0 = vld [vmem:[%s662_s0] sm:$0xff] (!%p162_p3)   ;;  %vm258_vm0 = vcmask (!%p162_p3), 261120   ;;  %v555_v3 = vld [vmem:[%s662_s0 + $0x8] sm:$0xff] (!%p162_p3)   ;;  %vm314_vm1 = vcmask (!%p162_p3), 523264   ;;  %vm327_vm2 = vcmask (!%p162_p3), 7168  }
   0x7   : > { %165 = sbr.rel (%p162_p3) target bundleno = 395 (0x18b), region = 28  ;;  %524 = vmatprep.mubr.msk.bf16.mxu0 (!%p162_p3), %vm258_vm0, %v554_v0 }
   0xe   : > { %s671_s12 = smov (!%p201_p4, %s570_s12), 1 }
   0xf   : > { %s513_s18 = sshll.u32 %s671_s12, 4  ;;  %s514_s24 = sshll.u32 %s671_s12, 5 }
  0x10   : > { %s208_s21 = scalar_lea.vmem %s663_s1, %s513_s18  ;;  %s217_s27 = scalar_lea.vmem %s664_s2, %s514_s24 }
  0x11   : > { %v552_v1 = vld [vmem:[%s208_s21] sm:$0xff]   ;;  %v553_v2 = vld [vmem:[%s208_s21 + $0x8] sm:$0xff]   ;;  %s226_s30 = scalar_lea.vmem %s665_s3, %s514_s24 }
  0x12   : > { %520 = vmatprep.subr.bf16.mxu0 %v552_v1 }
  0x13   : > { %521 = vmatpush3.bf16.msra.mxu0 %v552_v1 }
  0x14   : > { %522 = vmatprep.subr.bf16.mxu0 %v553_v2 }
  0x17   : > { %523 = vmatpush3.bf16.msra.mxu0 %v553_v2 }
  0x1a   : > { %525 = vmatmul.mubr.msk.bf16.vlgmr.msra.gmra.mrb[0].mxu0 %vm258_vm0, %v555_v3 }
  0xed   : > { %v526_v4 = vpop.f32.mrb[0].mxu0 }
  0xee   : > { %v299_v5 = vpop.f32.mrb[1].mxu0  ;;  %v321_v6 = vsel %vm314_vm1, %v526_v4, 0.0  ;;  %v334_v16 = vmul.f32 %v526_v4, %v526_v4 }
  0xef   : > { %322 = vadd.xlane.f32.xlu1 %v321_v6  ;;  %v527_v7 = vpop.f32.mrb[2].mxu0  ;;  %v315_v8 = vsel %vm314_vm1, %v299_v5, 0.0  ;;  %v332_v12 = vmul.f32 %v299_v5, %v299_v5 }
  0xf0   : > { %316 = vadd.xlane.f32.xlu0 %v315_v8  ;;  %v302_v9 = vpop.f32.mrb[3].mxu0  ;;  %v324_v11 = vsel %vm314_vm1, %v527_v7, 0.0  ;;  %v335_v14 = vmul.f32 %v527_v7, %v527_v7  ;;  %v342_v19 = vsel %vm314_vm1, %v334_v16, 0.0 }
  0xf1   : > { %v333_v10 = vmul.f32 %v302_v9, %v302_v9  ;;  %v318_v13 = vsel %vm314_vm1, %v302_v9, 0.0  ;;  %v336_v17 = vsel %vm314_vm1, %v332_v12, 0.0 }
  0xf2   : > { %v345_v18 = vsel %vm314_vm1, %v335_v14, 0.0 }
  0xf3   : > { %325 = vadd.xlane.f32.xlu1 %v324_v11  ;;  %v339_v15 = vsel %vm314_vm1, %v333_v10, 0.0 }
  0xf4   : > { %319 = vadd.xlane.f32.xlu0 %v318_v13 }
  0xf7   : > { %340 = vadd.xlane.f32.xlu1 %v339_v15 }
  0xf8   : > { %337 = vadd.xlane.f32.xlu0 %v336_v17 }
  0xfb   : > { %346 = vadd.xlane.f32.xlu1 %v345_v18 }
  0xfc   : > { %343 = vadd.xlane.f32.xlu0 %v342_v19 }
 0x17c   : > { %v323_v20 = vpop.xlane.xlu1 %322 }
 0x17d   : > { %330 = vst.msk [vmem:[%s217_s27 + $0x10] sm:$0xff] %vm327_vm2, %v323_v20  ;;  %v317_v21 = vpop.xlane.xlu0 %316 }
 0x17e   : > { %328 = vst.msk [vmem:[%s217_s27] sm:$0xff] %vm327_vm2, %v317_v21 }
 0x180   : > { %v326_v22 = vpop.xlane.xlu1 %325 }
 0x181   : > { %331 = vst.msk [vmem:[%s217_s27 + $0x18] sm:$0xff] %vm327_vm2, %v326_v22  ;;  %v320_v23 = vpop.xlane.xlu0 %319 }
 0x182   : > { %329 = vst.msk [vmem:[%s217_s27 + $0x8] sm:$0xff] %vm327_vm2, %v320_v23 }
 0x184   : > { %v341_v24 = vpop.xlane.xlu1 %340 }
 0x185   : > { %349 = vst.msk [vmem:[%s226_s30 + $0x8] sm:$0xff] %vm327_vm2, %v341_v24  ;;  %v338_v25 = vpop.xlane.xlu0 %337 }
 0x186   : > { %348 = vst.msk [vmem:[%s226_s30] sm:$0xff] %vm327_vm2, %v338_v25 }
 0x188   : > { %v347_v26 = vpop.xlane.xlu1 %346 }
 0x189   : > { %351 = vst.msk [vmem:[%s226_s30 + $0x18] sm:$0xff] %vm327_vm2, %v347_v26  ;;  %v344_v27 = vpop.xlane.xlu0 %343 }
 0x18a   : > { %350 = vst.msk [vmem:[%s226_s30 + $0x10] sm:$0xff] %vm327_vm2, %v344_v27 }
 0x18b PF: > { %s14_s14 = sadd.s32 1, %s578_s14   ;;  %s666_s12 = smov %s574_s13 }
 0x18c   : > { %p11_p5 = scmp.ge.s32.totalorder %s14_s14, 4   ;;  %s667_s13 = smov %s669_s15 }
 0x18e   :  { %13 = sbr.rel (!%p11_p5) target bundleno = 2 (0x2), region = 70 }

// kernel: simple_stem_in.3
= control target key start
LH: loop header
LB: loop body
LE: loop exit
PB: predicated region body
PF: predicated region fallthrough
CT: control target
= control target key end

     0   :  { %s576_s15 = smov 0   ;;  %s578_s16 = smov 0   ;;  %s645_s0 = inlined_call_operand.vmem [shape: bf16[32,32], index: 0, kind: input, shape index: {}]   ;;  %s646_s1 = inlined_call_operand.vmem [shape: bf16[2,32,64], index: 1, kind: input, shape index: {}]   ;;  %s647_s2 = inlined_call_operand.vmem [shape: f32[32,1], index: 2, kind: input, shape index: {}]   ;;  %s648_s3 = inlined_call_operand.vmem [shape: f32[32,1], index: 3, kind: input, shape index: {}]   ;;  %s649_s4 = inlined_call_operand.vmem [shape: f32[2,32,64], index: 4, kind: output, shape index: {}]  }
   0x1   :  { %s580_s17 = smov 0  }
   0x2 LB: > { %s26_s18 = sadd.s32 1, %s544_s16  ;;  %p468_p0 = scmp.ge.s32.totalorder %s548_s17, 1  ;;  %s548_s17 = sphi %s580_s17, %s14_s17   ;;  %s544_s16 = sphi %s578_s16, %s651_s16   ;;  %s540_s15 = sphi %s576_s15, %s650_s15  }
   0x3   : > { %p28_p1 = scmp.ge.s32.totalorder %s26_s18, 2  ;;  %p181_p2 = scmp.lt.s32.totalorder %s548_s17, 3 }
   0x5   : > { %s653_s18 = smov (%p28_p1, %s26_s18), 0  ;;  %p182_p3 = pnand %p468_p0, %p181_p2 }
   0x6   : > { %p213_p4 = scmp.lt.s32.totalorder (!%p182_p3), %s540_s15, 1  ;;  %v524_v0 = vld [vmem:[%s645_s0] sm:$0xff] (!%p182_p3)   ;;  %vm260_vm0 = vcmask (!%p182_p3), 261120   ;;  %v318_v1 = vld [vmem:[%s647_s2 + $0x10] sm:$0xff] (!%p182_p3)  ;;  %v550_v3 = vmov (!%p182_p3), 0   ;;  %v319_v4 = vld [vmem:[%s647_s2 + $0x18] sm:$0xff] (!%p182_p3) }
   0x7   : > { %185 = sbr.rel (%p182_p3) target bundleno = 248 (0xf8), region = 36  ;;  %491 = vmatprep.mubr.msk.bf16.mxu0 (!%p182_p3), %vm260_vm0, %v524_v0  ;;  %v316_v2 = vld [vmem:[%s647_s2] sm:$0xff] (!%p182_p3)  ;;  %521 = vset.pattern.permute.xlu1 (!%p182_p3), %v550_v3  ;;  %v317_v5 = vld [vmem:[%s647_s2 + $0x8] sm:$0xff] (!%p182_p3)  ;;  %v347_v11 = vld [vmem:[%s648_s3 + $0x18] sm:$0xff] (!%p182_p3)  ;;  %vm376_vm1 = vcmask (!%p182_p3), 523264  }
   0x8   : > { %520 = vset.pattern.permute.xlu0 (!%p182_p3), %v550_v3  ;;  %332 = vperm.xlu1 (!%p182_p3), %521, %v318_v1   ;;  %v345_v8 = vld [vmem:[%s648_s3 + $0x8] sm:$0xff] (!%p182_p3)  ;;  %v344_v9 = vld [vmem:[%s648_s3] sm:$0xff] (!%p182_p3)  ;;  %v346_v12 = vld [vmem:[%s648_s3 + $0x10] sm:$0xff] (!%p182_p3) }
   0x9   : > { %322 = vperm.xlu0 (!%p182_p3), %520, %v316_v2   ;;  %v525_v10 = vld [vmem:[%s645_s0 + $0x8] sm:$0xff] (!%p182_p3)  }
   0xc   : > { %337 = vperm.xlu1 (!%p182_p3), %521, %v319_v4  }
   0xd   : > { %327 = vperm.xlu0 (!%p182_p3), %520, %v317_v5  }
   0xe   : > { %s655_s15 = smov (!%p213_p4, %s540_s15), 1 }
   0xf   : > { %s481_s25 = sshll.u32 %s655_s15, 4  ;;  %s482_s21 = sshll.u32 %s655_s15, 5 }
  0x10   : > { %s220_s28 = scalar_lea.vmem %s646_s1, %s481_s25  ;;  %355 = vperm.xlu1 %521, %v345_v8   ;;  %s228_s24 = scalar_lea.vmem %s649_s4, %s482_s21 }
  0x11   : > { %v522_v6 = vld [vmem:[%s220_s28] sm:$0xff]   ;;  %v523_v7 = vld [vmem:[%s220_s28 + $0x8] sm:$0xff]   ;;  %350 = vperm.xlu0 %520, %v344_v9  }
  0x12   : > { %487 = vmatprep.subr.bf16.mxu0 %v522_v6 }
  0x13   : > { %488 = vmatpush3.bf16.msra.mxu0 %v522_v6 }
  0x14   : > { %489 = vmatprep.subr.bf16.mxu0 %v523_v7  ;;  %365 = vperm.xlu1 %521, %v347_v11  }
  0x15   : > { %360 = vperm.xlu0 %520, %v346_v12  }
  0x17   : > { %490 = vmatpush3.bf16.msra.mxu0 %v523_v7 }
  0x1a   : > { %492 = vmatmul.mubr.msk.bf16.vlgmr.msra.gmra.mrb[0].mxu0 %vm260_vm0, %v525_v10 }
  0x87   : > { %v333_v14 = vpop.permute.xlu1 %332 }
  0x88   : > { %v323_v13 = vpop.permute.xlu0 %322 }
  0x8b   : > { %v338_v16 = vpop.permute.xlu1 %337 }
  0x8c   : > { %v328_v15 = vpop.permute.xlu0 %327 }
  0x8f   : > { %v356_v18 = vpop.permute.xlu1 %355 }
  0x90   : > { %v351_v17 = vpop.permute.xlu0 %350 }
  0x93   : > { %v366_v28 = vpop.permute.xlu1 %365 }
  0x94   : > { %v361_v22 = vpop.permute.xlu0 %360 }
  0xed   : > { %v493_v19 = vpop.f32.mrb[0].mxu0 }
  0xee   : > { %v342_v20 = vmul.f32 %v493_v19, %v333_v14  ;;  %v301_v21 = vpop.f32.mrb[1].mxu0 }
  0xef   : > { %v340_v23 = vmul.f32 %v323_v13, %v301_v21  ;;  %v494_v24 = vpop.f32.mrb[2].mxu0 }
  0xf0   : > { %v370_v25 = vadd.f32 %v361_v22, %v342_v20  ;;  %v343_v26 = vmul.f32 %v494_v24, %v338_v16  ;;  %v304_v27 = vpop.f32.mrb[3].mxu0 }
  0xf1   : > { %v368_v29 = vadd.f32 %v351_v17, %v340_v23  ;;  %v341_v30 = vmul.f32 %v328_v15, %v304_v27 }
  0xf2   : > { %v374_v31 = vmax.f32 %v370_v25, 0.0  ;;  %v371_v32 = vadd.f32 %v366_v28, %v343_v26 }
  0xf3   : > { %v372_v33 = vmax.f32 %v368_v29, 0.0  ;;  %v369_v34 = vadd.f32 %v356_v18, %v341_v30 }
  0xf4   : > { %379 = vst.msk [vmem:[%s228_s24 + $0x10] sm:$0xff] %vm376_vm1, %v374_v31  ;;  %v375_v35 = vmax.f32 %v371_v32, 0.0 }
  0xf5   : > { %377 = vst.msk [vmem:[%s228_s24] sm:$0xff] %vm376_vm1, %v372_v33  ;;  %v373_v36 = vmax.f32 %v369_v34, 0.0 }
  0xf6   : > { %380 = vst.msk [vmem:[%s228_s24 + $0x18] sm:$0xff] %vm376_vm1, %v375_v35 }
  0xf7   : > { %378 = vst.msk [vmem:[%s228_s24 + $0x8] sm:$0xff] %vm376_vm1, %v373_v36 }
  0xf8 PF: > { %s14_s17 = sadd.s32 1, %s548_s17   ;;  %s650_s15 = smov %s544_s16 }
  0xf9   : > { %p11_p5 = scmp.ge.s32.totalorder %s14_s17, 4   ;;  %s651_s16 = smov %s653_s18 }
  0xfb   :  { %13 = sbr.rel (!%p11_p5) target bundleno = 2 (0x2), region = 66 }

</bundles_post_ra>
